<compile_context>
chip_gen: v7x
topology: tpu7x:2x2x1
jax: 0.10.0
libtpu: 0.0.40
codegen_flags: <defaults>
</compile_context>

<pallas_src>
import functools

import jax
import jax.numpy as jnp
from jax.experimental import pallas as pl
from jax.experimental.pallas import tpu as pltpu


def _warp_kernel(grid_ref, flow_ref, img_ref, out_ref, *, C, H, W):
    """One (batch, pixel-tile) grid step.

    grid_ref: (2, T)       base pixel coords (row, col) for this pixel tile
    flow_ref: (1, 2, T)    displacement field (row, col)
    img_ref : (1, C*H, W)  full image for this batch element
    out_ref : (1, C, T)    warped output tile
    """
    g = grid_ref[...].astype(jnp.float32)          # (2, T)
    f = flow_ref[0].astype(jnp.float32)            # (2, T)
    y = g[0:1, :] + f[0:1, :]                      # (1, T) sampling row (pixels)
    x = g[1:2, :] + f[1:2, :]                      # (1, T) sampling col (pixels)

    # Bilinear "tent" weights: row h gets max(0, 1 - |h - y|).  Rows / cols
    # outside [0, dim-1] get weight 0 -> zeros padding for free.
    hh = jax.lax.broadcasted_iota(jnp.int32, (H, 1), 0).astype(jnp.float32)
    ww = jax.lax.broadcasted_iota(jnp.int32, (W, 1), 0).astype(jnp.float32)
    a = jnp.maximum(1.0 - jnp.abs(hh - y), 0.0)    # (H, T)
    bx = jnp.maximum(1.0 - jnp.abs(ww - x), 0.0)   # (W, T)

    # Column contraction on the MXU: (C*H, W) @ (W, T) -> (C*H, T).
    img2d = img_ref[0].astype(jnp.float32)
    t1 = jnp.dot(img2d, bx, preferred_element_type=jnp.float32)

    # Row contraction: per-pixel row weights, then a constant block-selector
    # matmul sums the H rows of each channel block (stays on the MXU; no
    # cross-sublane reduction).
    a_rep = jnp.tile(a, (C, 1))                    # (C*H, T)
    prod = t1 * a_rep                              # (C*H, T)
    ci = jax.lax.broadcasted_iota(jnp.int32, (C, C * H), 0)
    ri = jax.lax.broadcasted_iota(jnp.int32, (C, C * H), 1)
    sel = ((ri >= ci * H) & (ri < (ci + 1) * H)).astype(jnp.float32)  # (C, C*H)
    out = jnp.dot(sel, prod, preferred_element_type=jnp.float32)      # (C, T)

    out_ref[0] = out.astype(out_ref.dtype)


def _pick_tile(hw, C, H, W, *, vmem_budget=40 * 1024 * 1024, max_tile=2048):
    """Largest lane-friendly pixel tile (multiple of 128) dividing HW.

    Capped so that the per-step f32 working set (double-buffered I/O +
    in-kernel intermediates) stays comfortably inside scoped VMEM.
    """
    # per-pixel bytes: base/flow/out (double buffered) + A, Bx, t1, prod
    per_pixel = 4 * (2 * (2 + 2 + C) + H + W + 2 * C * H)
    fixed = 4 * 2 * C * H * W  # double-buffered image block
    avail = max(vmem_budget - fixed, per_pixel * 128)
    cap = max(128, min(max_tile, (avail // per_pixel) // 128 * 128))
    if hw <= cap:
        return hw
    for t in range(cap, 127, -128):
        if hw % t == 0:
            return t
    return hw  # fall back to a single tile


def warp(flow, image, *, tile=None, interp_mode="bilinear"):
    """Pallas equivalent of Warp(img_size=(H, W), align_corners=True)(flow, image)."""
    assert interp_mode == "bilinear", "only bilinear interp_mode is implemented"
    B, C, H, W = image.shape
    assert flow.shape == (B, 2, H, W), "2-D warp: flow must be (B, 2, H, W)"
    HW = H * W

    if tile is None:
        tile = _pick_tile(HW, C, H, W)
    assert HW % tile == 0, "pixel tile must divide H*W"
    n_tiles = HW // tile

    # Base sampling grid (the module's constant `grid` buffer), flattened.
    base = jnp.stack(
        jnp.meshgrid(jnp.arange(H, dtype=jnp.float32),
                     jnp.arange(W, dtype=jnp.float32),
                     indexing="ij"),
        axis=0,
    ).reshape(2, HW)                                   # (2, HW): row, col

    flow_flat = flow.reshape(B, 2, HW)                 # native dtype (no cast)
    img2d = image.reshape(B, C * H, W)                 # native dtype (no cast)

    kernel = functools.partial(_warp_kernel, C=C, H=H, W=W)
    out = pl.pallas_call(
        kernel,
        out_shape=jax.ShapeDtypeStruct((B, C, HW), image.dtype),
        grid_spec=pltpu.PrefetchScalarGridSpec(
            num_scalar_prefetch=0,
            grid=(B, n_tiles),
            in_specs=[
                pl.BlockSpec((2, tile), lambda b, j: (0, j)),        # base grid
                pl.BlockSpec((1, 2, tile), lambda b, j: (b, 0, j)),  # flow
                pl.BlockSpec((1, C * H, W), lambda b, j: (b, 0, 0)), # image
            ],
            out_specs=pl.BlockSpec((1, C, tile), lambda b, j: (b, 0, j)),
        ),
        compiler_params=pltpu.CompilerParams(
            dimension_semantics=("parallel", "parallel"),
            vmem_limit_bytes=48 * 1024 * 1024,
        ),
    )(base, flow_flat, img2d)
    return out.reshape(B, C, H, W)


def warp_reference(flow, image):
    """Pure-JAX reference (same bilinear / zeros-padding semantics as grid_sample)."""
    B, C, H, W = image.shape
    row = jnp.arange(H, dtype=jnp.float32)[:, None]
    col = jnp.arange(W, dtype=jnp.float32)[None, :]
    y = row + flow[:, 0]
    x = col + flow[:, 1]
    y0 = jnp.floor(y)
    x0 = jnp.floor(x)
    wy = y - y0
    wx = x - x0
    img_flat = image.reshape(B, C, H * W)
    out = jnp.zeros((B, C, H, W), jnp.float32)
    for dy in (0, 1):
        for dx in (0, 1):
            yc = y0 + dy
            xc = x0 + dx
            valid = (yc >= 0) & (yc <= H - 1) & (xc >= 0) & (xc <= W - 1)
            w = (wy if dy else 1.0 - wy) * (wx if dx else 1.0 - wx)
            w = jnp.where(valid, w, 0.0)
            yi = jnp.clip(yc, 0, H - 1).astype(jnp.int32)
            xi = jnp.clip(xc, 0, W - 1).astype(jnp.int32)
            idx = (yi * W + xi).reshape(B, 1, H * W)
            idx = jnp.broadcast_to(idx, (B, C, H * W))
            g = jnp.take_along_axis(img_flat, idx, axis=2).reshape(B, C, H, W)
            out = out + w[:, None] * g
    return out


if __name__ == "__main__":
    B, C, H, W = 2, 4, 16, 16
    key = jax.random.PRNGKey(0)
    k_img, k_flow = jax.random.split(key)
    image = jax.random.normal(k_img, (B, C, H, W), dtype=jnp.float32)
    # displacements of a few pixels, some pointing out of bounds
    flow = 2.5 * jax.random.normal(k_flow, (B, 2, H, W), dtype=jnp.float32)

    # tile=128 -> 2 pixel tiles per batch element, exercising the tiled path.
    out = jax.block_until_ready(warp(flow, image, tile=128))
    ref = jax.block_until_ready(warp_reference(flow, image))

    assert out.shape == (B, C, H, W)
    assert out.dtype == image.dtype
    err = float(jnp.max(jnp.abs(out - ref)))
    assert err < 2e-3, err

    # Also exercise the default (single-tile) path.
    out2 = jax.block_until_ready(warp(flow, image))
    err2 = float(jnp.max(jnp.abs(out2 - ref)))
    assert err2 < 2e-3, err2

    print("KERNEL_OK")
</pallas_src>

<mosaic_0001>
module attributes {stable_mosaic.version = 11 : i64} {
  func.func @_warp_kernel(%arg0: i32, %arg1: i32, %arg2: memref<2x128xf32, #tpu.memory_space<vmem>>, %arg3: memref<1x2x128xf32, #tpu.memory_space<vmem>>, %arg4: memref<1x64x16xf32, #tpu.memory_space<vmem>>, %arg5: memref<1x4x128xf32, #tpu.memory_space<vmem>>) attributes {dimension_semantics = [#tpu.dimension_semantics<parallel>, #tpu.dimension_semantics<parallel>], iteration_bounds = array<i64: 2, 2>, scalar_prefetch = 0 : i64, scratch_operands = 0 : i64, tpu.core_type = #tpu.core_type<tc>, window_params = [{transform_indices = @transform_0, window_bounds = array<i64: 2, 128>}, {transform_indices = @transform_1, window_bounds = array<i64: 1, 2, 128>}, {transform_indices = @transform_2, window_bounds = array<i64: 1, 64, 16>}, {transform_indices = @transform_3, window_bounds = array<i64: 1, 4, 128>}]} {
    %c0 = arith.constant 0 : index
    %c0_0 = arith.constant 0 : index
    %0 = vector.load %arg2[%c0, %c0_0] : memref<2x128xf32, #tpu.memory_space<vmem>>, vector<2x128xf32>
    %c0_1 = arith.constant 0 : index
    %c0_2 = arith.constant 0 : index
    %c0_3 = arith.constant 0 : index
    %1 = vector.load %arg3[%c0_1, %c0_2, %c0_3] : memref<1x2x128xf32, #tpu.memory_space<vmem>>, vector<1x2x128xf32>
    %2 = vector.shape_cast %1 : vector<1x2x128xf32> to vector<2x128xf32>
    %3 = vector.extract_strided_slice %0 {offsets = [0, 0], sizes = [1, 128], strides = [1, 1]} : vector<2x128xf32> to vector<1x128xf32>
    %4 = vector.extract_strided_slice %2 {offsets = [0, 0], sizes = [1, 128], strides = [1, 1]} : vector<2x128xf32> to vector<1x128xf32>
    %5 = arith.addf %3, %4 : vector<1x128xf32>
    %6 = vector.extract_strided_slice %0 {offsets = [1, 0], sizes = [1, 128], strides = [1, 1]} : vector<2x128xf32> to vector<1x128xf32>
    %7 = vector.extract_strided_slice %2 {offsets = [1, 0], sizes = [1, 128], strides = [1, 1]} : vector<2x128xf32> to vector<1x128xf32>
    %8 = arith.addf %6, %7 : vector<1x128xf32>
    %9 = tpu.iota {dimensions = array<i32: 0>} : vector<16x1xi32>
    %10 = arith.sitofp %9 : vector<16x1xi32> to vector<16x1xf32>
    %11 = tpu.iota {dimensions = array<i32: 0>} : vector<16x1xi32>
    %12 = arith.sitofp %11 : vector<16x1xi32> to vector<16x1xf32>
    %13 = vector.broadcast %10 : vector<16x1xf32> to vector<16x128xf32>
    %14 = vector.broadcast %5 : vector<1x128xf32> to vector<16x128xf32>
    %15 = arith.subf %13, %14 : vector<16x128xf32>
    %16 = math.absf %15 : vector<16x128xf32>
    %cst = arith.constant 1.000000e+00 : f32
    %17 = vector.broadcast %cst : f32 to vector<16x128xf32>
    %18 = arith.subf %17, %16 : vector<16x128xf32>
    %cst_4 = arith.constant 0.000000e+00 : f32
    %19 = vector.broadcast %cst_4 : f32 to vector<16x128xf32>
    %20 = arith.maximumf %18, %19 : vector<16x128xf32>
    %21 = vector.broadcast %12 : vector<16x1xf32> to vector<16x128xf32>
    %22 = vector.broadcast %8 : vector<1x128xf32> to vector<16x128xf32>
    %23 = arith.subf %21, %22 : vector<16x128xf32>
    %24 = math.absf %23 : vector<16x128xf32>
    %cst_5 = arith.constant 1.000000e+00 : f32
    %25 = vector.broadcast %cst_5 : f32 to vector<16x128xf32>
    %26 = arith.subf %25, %24 : vector<16x128xf32>
    %cst_6 = arith.constant 0.000000e+00 : f32
    %27 = vector.broadcast %cst_6 : f32 to vector<16x128xf32>
    %28 = arith.maximumf %26, %27 : vector<16x128xf32>
    %c0_7 = arith.constant 0 : index
    %c0_8 = arith.constant 0 : index
    %c0_9 = arith.constant 0 : index
    %29 = vector.load %arg4[%c0_7, %c0_8, %c0_9] : memref<1x64x16xf32, #tpu.memory_space<vmem>>, vector<1x64x16xf32>
    %30 = vector.shape_cast %29 : vector<1x64x16xf32> to vector<64x16xf32>
    %cst_10 = arith.constant dense<0.000000e+00> : vector<64x128xf32>
    %31 = tpu.matmul %30, %28, %cst_10 {dimension_numbers = #tpu.dot_dimension_numbers<[1], [0], [0], [1], [0, 0, 1, 1], [], []>} : vector<64x16xf32>, vector<16x128xf32>, vector<64x128xf32> -> vector<64x128xf32>
    %32 = tpu.concatenate %20, %20, %20, %20 in 0 : vector<16x128xf32>, vector<16x128xf32>, vector<16x128xf32>, vector<16x128xf32> -> vector<64x128xf32>
    %33 = arith.mulf %31, %32 : vector<64x128xf32>
    %34 = tpu.iota {dimensions = array<i32: 0>} : vector<4x64xi32>
    %35 = tpu.iota {dimensions = array<i32: 1>} : vector<4x64xi32>
    %c16_i32 = arith.constant 16 : i32
    %36 = vector.broadcast %c16_i32 : i32 to vector<4x64xi32>
    %37 = arith.muli %34, %36 : vector<4x64xi32>
    %38 = arith.cmpi sge, %35, %37 : vector<4x64xi32>
    %c1_i32 = arith.constant 1 : i32
    %39 = vector.broadcast %c1_i32 : i32 to vector<4x64xi32>
    %40 = arith.addi %34, %39 : vector<4x64xi32>
    %c16_i32_11 = arith.constant 16 : i32
    %41 = vector.broadcast %c16_i32_11 : i32 to vector<4x64xi32>
    %42 = arith.muli %40, %41 : vector<4x64xi32>
    %43 = arith.cmpi slt, %35, %42 : vector<4x64xi32>
    %44 = arith.andi %38, %43 : vector<4x64xi1>
    %45 = arith.extui %44 : vector<4x64xi1> to vector<4x64xi32>
    %46 = arith.sitofp %45 : vector<4x64xi32> to vector<4x64xf32>
    %cst_12 = arith.constant dense<0.000000e+00> : vector<4x128xf32>
    %47 = tpu.matmul %46, %33, %cst_12 {dimension_numbers = #tpu.dot_dimension_numbers<[1], [0], [0], [1], [0, 0, 1, 1], [], []>} : vector<4x64xf32>, vector<64x128xf32>, vector<4x128xf32> -> vector<4x128xf32>
    %c0_13 = arith.constant 0 : index
    %c0_14 = arith.constant 0 : index
    %c0_15 = arith.constant 0 : index
    %48 = vector.load %arg5[%c0_13, %c0_14, %c0_15] : memref<1x4x128xf32, #tpu.memory_space<vmem>>, vector<1x4x128xf32>
    %49 = vector.shape_cast %48 : vector<1x4x128xf32> to vector<4x128xf32>
    %50 = vector.shape_cast %47 : vector<4x128xf32> to vector<1x4x128xf32>
    tpu.vector_store %arg5[%c0_13, %c0_14, %c0_15], %50 {strides = array<i32>} : memref<1x4x128xf32, #tpu.memory_space<vmem>>, vector<1x4x128xf32>,
    return
  }
  func.func @transform_0(%arg0: i32, %arg1: i32) -> (i32, i32) {
    %c0_i32 = arith.constant 0 : i32
    %c0_i32_0 = arith.constant 0 : i32
    return %c0_i32, %arg1 : i32, i32
  }
  func.func @transform_1(%arg0: i32, %arg1: i32) -> (i32, i32, i32) {
    %c0_i32 = arith.constant 0 : i32
    %c0_i32_0 = arith.constant 0 : i32
    return %arg0, %c0_i32, %arg1 : i32, i32, i32
  }
  func.func @transform_2(%arg0: i32, %arg1: i32) -> (i32, i32, i32) {
    %c0_i32 = arith.constant 0 : i32
    %c0_i32_0 = arith.constant 0 : i32
    %c0_i32_1 = arith.constant 0 : i32
    return %arg0, %c0_i32, %c0_i32_0 : i32, i32, i32
  }
  func.func @transform_3(%arg0: i32, %arg1: i32) -> (i32, i32, i32) {
    %c0_i32 = arith.constant 0 : i32
    %c0_i32_0 = arith.constant 0 : i32
    return %arg0, %c0_i32, %arg1 : i32, i32, i32
  }
}

</mosaic_0001>

<bundles_post_ra>
// kernel: tpu_custom_call.1
= control target key start
LH: loop header
LB: loop body
LE: loop exit
PB: predicated region body
PF: predicated region fallthrough
CT: control target
= control target key end

     0   :  { %8 = vsyncpa [#allocation3], 0  ;;  %s1074_s0 = inlined_call_operand.vmem [shape: f32[2,256], index: 0, kind: input, shape index: {}]   ;;  %s1075_s1 = inlined_call_operand.vmem [shape: f32[2,2,256], index: 1, kind: input, shape index: {}]   ;;  %s1076_s2 = inlined_call_operand.vmem [shape: f32[2,64,16], index: 2, kind: input, shape index: {}]   ;;  %s1077_s3 = inlined_call_operand.hbm [shape: f32[2,4,256], index: 3, kind: output, shape index: {}]  }
   0x1   :  { %10 = vsyncpa [#allocation3 + $0x1], 0  ;;  %s903_s12 = smov 0   ;;  %s905_s13 = smov 0  }
   0x2   :  { %s907_s14 = smov 0   ;;  %s909_s15 = smov 0  }
   0x3   :  { %s911_s16 = smov 0   ;;  %s913_s17 = smov 0  }
   0x4   :  { %s915_s18 = smov 0   ;;  %s917_s19 = smov 0  }
   0x5 LB: > { %s612_s20 = sadd.s32 4294967295, %s877_s19   ;;  %s613_s21 = sadd.s32 4294967294, %s877_s19   ;;  %s877_s19 = sphi %s917_s19, %s16_s19   ;;  %s873_s18 = sphi %s915_s18, %s1092_s18   ;;  %s869_s17 = sphi %s913_s17, %s1091_s17   ;;  %s865_s16 = sphi %s911_s16, %s1090_s16   ;;  %s861_s15 = sphi %s909_s15, %s1089_s15   ;;  %s857_s14 = sphi %s907_s14, %s1088_s14   ;;  %s853_s13 = sphi %s905_s13, %s1087_s13   ;;  %s849_s12 = sphi %s903_s12, %s1086_s12  }
   0x6   : > { %s25_s22 = sadd.s32 1, %s869_s17  ;;  %s28_s23 = sadd.s32 1, %s873_s18 }
   0x7   : > { %p26_p0 = scmp.ge.s32.totalorder %s25_s22, 2  ;;  %p127_p1 = scmp.ne.s32.totalorder %s857_s14, %s853_s13 }
   0x8   : > { %p128_p2 = scmp.eq.s32.totalorder %s612_s20, 3  ;;  %p133_p5 = scmp.ne.s32.totalorder %s853_s13, %s849_s12 }
   0x9   : > { %s1094_s22 = smov (%p26_p0, %s25_s22), 0  ;;  %s1096_s23 = smov (!%p26_p0, %s28_s23), %s873_s18 }
   0xa   : > { %1080 = sst [smem:[#allocation5_spill]] %s1094_s22  ;;  %s113_s24 = ssub.s32 %s869_s17, %s1094_s22 }
   0xb   : > { %p954_p3 = por %p128_p2, %p127_p1  ;;  %p30_p4 = scmp.ge.s32.totalorder %s1096_s23, 2 }
   0xc   : > { %p134_p6 = scmp.eq.s32.totalorder %s613_s21, 3  ;;  %p616_p7 = scmp.ge.s32.totalorder %s877_s19, 1 }
   0xd   : > { %s1098_s23 = smov (%p30_p4, %s1096_s23), 0  ;;  %p178_p9 = scmp.lt.s32.totalorder %s877_s19, 5 }
   0xe   : > { %1082 = sst [smem:[#allocation6_spill]] %s1098_s23  ;;  %p963_p8 = por %p134_p6, %p133_p5 }
   0xf   : > { %s112_s27 = ssub.s32 %s873_s18, %s1098_s23  ;;  %s117_s28 = sadd.s32 1, %s857_s14 }
  0x10   : > { %s114_s29 = sor.u32 %s113_s24, %s112_s27  ;;  %p179_p10 = pnand %p616_p7, %p178_p9 }
  0x11   : > { %p115_p11 = scmp.eq.s32.totalorder %s114_s29, 0  ;;  %p214_p12 = scmp.lt.s32.totalorder (!%p179_p10), %s861_s15, 1  ;;  %v234_v0 = vlaneseq (!%p179_p10)  ;;  %vm271_vm0 = vcmask (!%p179_p10), 130048   ;;  %v879_v31 = vmov (!%p179_p10), 0.0|0.0   ;;  %vm880_vm1 = vmmov (!%p179_p10), 0  }
  0x12   : > { %182 = sbr.rel (%p179_p10) target bundleno = 509 (0x1fd), region = 32  ;;  %p218_p13 = scmp.lt.s32.totalorder (!%p179_p10), %s865_s16, 1  ;;  %697 = vmatprep.subr.bf16.mxu1 (!%p179_p10), %v879_v31  ;;  %v881_v32 = vmov (!%p179_p10), 0.0   ;;  %vm419_vm5 = vcmask (!%p179_p10), 523264  }
  0x13   : > { %s972_s30 = scalar_select %p115_p11, %s857_s14, %s117_s28  }
  0x14   : > { %v978_v1 = vshrl.u32 (!%p179_p10), %v234_v0, 7  ;;  %690 = vmatprep.mubr.msk.f32.mxu1 (!%p179_p10), %vm880_vm1, %v881_v32  ;;  %v410_v51 = vand.u32 (!%p179_p10), 127, %v234_v0 }
  0x16   : > { %v236_v2 = vadd.s32 (!%p179_p10), 8, %v978_v1  ;;  %v241_v4 = vsub.s32 (!%p179_p10), 0, %v978_v1  ;;  %v253_v5 = vsub.s32 (!%p179_p10), 1, %v978_v1  ;;  %v237_v9 = vcvt.s32.f32 (!%p179_p10), %v978_v1 }
  0x17   : > { %v413_v45 = vadd.s32 (!%p179_p10), 1, %v978_v1  ;;  %v411_v52 = vmul.u32 (!%p179_p10), 16, %v978_v1 }
  0x18   : > { %v238_v10 = vcvt.s32.f32 (!%p179_p10), %v236_v2 }
  0x19   : > { %s215_s4 = scalar_select %p214_p12, %s861_s15, 1  ;;  %v414_v53 = vmul.u32 16, %v413_v45  ;;  %vm412_vm2 = vcmp.ge.s32.totalorder %v410_v51, %v411_v52 }
  0x1a   : > { %s219_s5 = scalar_select %p218_p13, %s865_s16, 1 }
  0x1b   : > { %s618_s6 = sshll.u32 %s215_s4, 1  ;;  %vm415_vm3 = vcmp.lt.s32.totalorder %v410_v51, %v414_v53 }
  0x1c   : > { %s217_s9 = scalar_lea.vmem %s1074_s0, %s618_s6  ;;  %s619_s10 = sshll.u32 %s219_s5, 1  ;;  %vm416_vm4 = vmand %vm412_vm2, %vm415_vm3 }
  0x1d   : > { %s223_s11 = sadd.s32 %s619_s10, %s215_s4  ;;  %s638_s20 = sshll.u32 %s219_s5, 6  ;;  %v231_v3 = vld [vmem:[%s217_s9] sm:$0x3]  ;;  %v631_v63 = vsel %vm416_vm4, 1.0, %v881_v32 }
  0x1e   : > { %s620_s21 = sshll.u32 %s223_s11, 1  ;;  %s988_s28 = scalar_lea.vmem %s1076_s2, %s638_s20 }
  0x1f   : > { %s225_s22 = scalar_lea.vmem %s1075_s1, %s620_s21  ;;  %v263_v6 = vld [vmem:[%s988_s28] sm:$0xff]  ;;  %v264_v24 = vld [vmem:[%s988_s28 + $0x8] sm:$0xff]  ;;  %v265_v25 = vld [vmem:[%s988_s28 + $0x10] sm:$0xff]  ;;  %s634_s4 = sshll.u32 %s865_s16, 1 }
  0x20   : > { %v232_v7 = vld [vmem:[%s225_s22] sm:$0x3]  ;;  %662 = vmatprep.mubr.msk.f32.mxu0 %vm271_vm0, %v263_v6  ;;  %v266_v26 = vld [vmem:[%s988_s28 + $0x18] sm:$0xff]  ;;  %v268_v28 = vld [vmem:[%s988_s28 + $0x28] sm:$0xff]  ;;  %s211_s22 = sand.u32 1, %s853_s13   ;;  %s506_s5 = sadd.s32 %s861_s15, %s634_s4 }
  0x21   : > { %v233_v8 = vadd.f32 %v232_v7, %v231_v3  ;;  %v267_v27 = vld [vmem:[%s988_s28 + $0x20] sm:$0xff]  ;;  %v269_v29 = vld [vmem:[%s988_s28 + $0x30] sm:$0xff]  ;;  %v270_v30 = vld [vmem:[%s988_s28 + $0x38] sm:$0xff]  ;;  %s617_s23 = sshll.u32 %s211_s22, 2  ;;  %s635_s8 = sshll.u32 %s506_s5, 6 }
  0x22   : > { %s213_s6 = scalar_lea.vmem [#allocation2], %s617_s23  ;;  %s1023_s11 = scalar_lea.hbm %s1077_s3, %s635_s8 }
  0x23   : > { %v242_v11 = vrot.slane %v233_v8, %v241_v4  ;;  %v254_v12 = vrot.slane %v233_v8, %v253_v5  ;;  %s510_s7 = sshll.u32 %s213_s6, 4  ;;  %s495_s20 = scalar_lea.sflag [#allocation3], %s211_s22  ;;  %s1018_s7 = int_to_ptr.vmem [resolvable:$true] %s510_s7 }
  0x24   : > { %s783_s21 = scalar_lea.vmem %s1018_s7, 64  ;;  %s882_s15 = smov [#allocation2]  }
  0x25   : > { %v243_v13 = vsub.f32 %v237_v9, %v242_v11  ;;  %v244_v14 = vsub.f32 %v238_v10, %v242_v11  ;;  %v255_v15 = vsub.f32 %v237_v9, %v254_v12  ;;  %v256_v16 = vsub.f32 %v238_v10, %v254_v12  ;;  %p784_p0 = scmp.ne.s32.totalorder %s1018_s7, %s783_s21  ;;  %s787_s16 = sshll.u32 %s882_s15, 4  ;;  %s788_s16 = int_to_ptr.vmem [resolvable:$false] %s787_s16 }
  0x26   : > { %s789_s24 = scalar_lea.vmem %s788_s16, 128  ;;  %p790_p4 = scmp.lt.s32.totalorder %s1018_s7, %s788_s16 }
  0x27   : > { %v257_v17 = vand.u32 2147483647, %v255_v15  ;;  %v258_v18 = vand.u32 2147483647, %v256_v16  ;;  %v246_v33 = vand.u32 2147483647, %v244_v14  ;;  %p785_p1 = pnand %p784_p0, %p954_p3  ;;  %p791_p5 = scmp.lt.s32.totalorder %s789_s24, %s783_s21 }
  0x28   : > { %v245_v34 = vand.u32 2147483647, %v243_v13 }
  0x29   : > { %v259_v19 = vsub.f32 1.0, %v257_v17  ;;  %v260_v20 = vsub.f32 1.0, %v258_v18  ;;  %v248_v35 = vsub.f32 1.0, %v246_v33  ;;  %p786_p2 = pneg %p785_p1  ;;  %p792_p6 = por %p791_p5, %p790_p4 }
  0x2a   : > { %v247_v36 = vsub.f32 1.0, %v245_v34 }
  0x2b   : > { %v261_v21 = vmax.f32 %v259_v19, 0.0  ;;  %v262_v22 = vmax.f32 %v260_v20, 0.0  ;;  %v250_v37 = vmax.f32 %v248_v35, 0.0  ;;  %p793_p7 = pnand %p792_p6, %p786_p2 }
  0x2c   : > { %v249_v38 = vmax.f32 %v247_v36, 0.0 }
  0x2d   : > { %v693_v23 = vpack.c.bf16 %v262_v22, %v261_v21 }
  0x2f   : > { %694 = vmatprep.subr.bf16.mxu0 %v693_v23 }
  0x30   : > { %696 = vmatpush3.bf16.msra.mxu0 %v693_v23 }
  0x33   : > { %663 = vmatmul.mubr.msk.f32.vlgmr.msra.gmra.mrb[0].mxu0 %vm271_vm0, %v264_v24 }
  0x34   : > { %665 = vmatprep.mubr.msk.f32.mxu0 %vm271_vm0, %v265_v25 }
  0x37   : > { %666 = vmatmul.mubr.msk.f32.gmra.mrb[2].mxu0 %vm271_vm0, %v266_v26 }
  0x38   : > { %668 = vmatprep.mubr.msk.f32.mxu0 %vm271_vm0, %v267_v27 }
  0x3b   : > { %669 = vmatmul.mubr.msk.f32.gmra.mrb[4].mxu0 %vm271_vm0, %v268_v28 }
  0x3c   : > { %671 = vmatprep.mubr.msk.f32.mxu0 %vm271_vm0, %v269_v29 }
  0x3f   : > { %672 = vmatmul.mubr.msk.f32.gmra.mrb[6].mxu0 %vm271_vm0, %v270_v30 }
 0x106   : > { %v664_v39 = vpop.f32.mrb[0].mxu0 }
 0x107   : > { %v402_v40 = vmul.f32 %v664_v39, %v250_v37  ;;  %v362_v41 = vpop.f32.mrb[1].mxu0 }
 0x108   : > { %v401_v42 = vmul.f32 %v362_v41, %v249_v38 }
 0x10a   : > { %v667_v43 = vpop.f32.mrb[2].mxu0  ;;  %v698_v44 = vpack.c.bf16 %v402_v40, %v401_v42 }
 0x10b   : > { %v404_v46 = vmul.f32 %v667_v43, %v250_v37  ;;  %v372_v47 = vpop.f32.mrb[3].mxu0 }
 0x10c   : > { %v403_v48 = vmul.f32 %v372_v47, %v249_v38  ;;  %699 = vmatpush3.bf16.msra.mxu1 %v698_v44 }
 0x10d   : > { %700 = vmatprep.subr.bf16.mxu1 %v879_v31 }
 0x10e   : > { %v701_v49 = vpack.c.bf16 %v404_v46, %v403_v48  ;;  %v670_v50 = vpop.f32.mrb[4].mxu0 }
 0x10f   : > { %v406_v54 = vmul.f32 %v670_v50, %v250_v37  ;;  %v382_v55 = vpop.f32.mrb[5].mxu0 }
 0x110   : > { %v405_v56 = vmul.f32 %v382_v55, %v249_v38  ;;  %702 = vmatpush3.bf16.msra.mxu1 %v701_v49 }
 0x111   : > { %703 = vmatprep.subr.bf16.mxu1 %v879_v31 }
 0x112   : > { %v704_v57 = vpack.c.bf16 %v406_v54, %v405_v56  ;;  %v673_v58 = vpop.f32.mrb[6].mxu0 }
 0x113   : > { %v408_v59 = vmul.f32 %v673_v58, %v250_v37  ;;  %v392_v60 = vpop.f32.mrb[7].mxu0 }
 0x114   : > { %v407_v61 = vmul.f32 %v392_v60, %v249_v38  ;;  %705 = vmatpush3.bf16.msra.mxu1 %v704_v57 }
 0x115   : > { %706 = vmatprep.subr.bf16.mxu1 %v879_v31 }
 0x116   : > { %v707_v62 = vpack.c.bf16 %v408_v59, %v407_v61 }
 0x118   : > { %708 = vmatpush3.bf16.msra.mxu1 %v707_v62 }
 0x11b   : > { %691 = vmatmul.mubr.msk.f32.vlgmr.msra.gmra.mrb[0].mxu1 %vm419_vm5, %v631_v63 }
 0x1ee   : > { %v489_v0 = vpop.f32.mrb[0].mxu1 }
 0x1ef   : > { %493 = vst [vmem:[%s213_s6] sm:$0xf] %v489_v0  ;;  %v692_v1 = vpop.f32.mrb[1].mxu1 }
 0x1f0   : > { %796 = shalt.err (!%p793_p7)
}
 0x1f1   : > { %s797_s27 = scalar_lea.hbm %s1023_s11, 64  ;;  %s801_s22 = scalar_lea.hbm %s1077_s3, 256 }
 0x1f2   : > { %p798_p9 = scmp.ne.s32.totalorder %s1023_s11, %s797_s27  ;;  %p802_p12 = scmp.lt.u32.totalorder %s1023_s11, %s1077_s3 }
 0x1f3   : > { %p803_p13 = scmp.lt.u32.totalorder %s801_s22, %s797_s27  ;;  %p805_p1 = scmp.lt.u32.totalorder %s797_s27, %s1023_s11 }
 0x1f4   : > { %p799_p10 = pnand %p798_p9, %p954_p3 }
 0x1f5   : > { %p804_p0 = por %p803_p13, %p802_p12 }
 0x1f6   : > { %p800_p11 = pneg %p799_p10 }
 0x1f7   : > { %p806_p2 = por %p805_p1, %p804_p0 }
 0x1f9   : > { %p807_p4 = pnand %p806_p2, %p800_p11 }
 0x1fb   : > { %810 = shalt.err (!%p807_p4)
}
 0x1fc   : > { %709 = dma.vmem_to_hbm [thread:$0]  (%p954_p3), %s1018_s7, 64, %s1023_s11, %s495_s20  }
 0x1fd PF: > { %p715_p5 = scmp.ge.s32.totalorder %s877_s19, 2  ;;  %s522_s5 = sand.u32 1, %s849_s12  }
 0x1fe   : > { %s523_s6 = scalar_lea.sflag [#allocation3], %s522_s5 }
 0x1ff   : > { %p712_p6 = pnand %p715_p5, %p963_p8 }
 0x201   : > { %844 = dma.done.wait (!%p712_p6), %s523_s6, 64  }
 0x202   : > { %846 = vsyncadd (!%p712_p6), %s523_s6, 4294967232  ;;  %s16_s19 = sadd.s32 1, %s877_s19   ;;  %s1084_s25 = sld [smem:[#allocation5_spill]] }
 0x203   : > { %p13_p7 = scmp.ge.s32.totalorder %s16_s19, 6   ;;  %s1085_s7 = sld [smem:[#allocation6_spill]] }
 0x204   : > { %s1086_s12 = smov %s853_s13  ;;  %s1087_s13 = smov %s857_s14 }
 0x205   : > { %s1088_s14 = smov %s972_s30  ;;  %s1089_s15 = smov %s869_s17 }
 0x206   : > { %s1090_s16 = smov %s873_s18  ;;  %15 = sbr.rel (!%p13_p7) target bundleno = 5 (0x5), region = 73 }
 0x208   : > { %s1091_s17 = smov %s1084_s25 }
 0x209   : > { %s1092_s18 = smov %s1085_s7 }
 0x20d   :  { %528 = vsyncpa [#allocation3], 1 }
 0x20e   :  { %530 = vsyncpa [#allocation3 + $0x1], 1 }

</bundles_post_ra>
